<compile_context>
chip_gen: v5e
topology: v5e:2x2
jax: 0.10.0
libtpu: 0.0.40
codegen_flags: <defaults>
</compile_context>

<pallas_src>
import jax
import jax.numpy as jnp
from jax.experimental import pallas as pl
from jax.experimental.pallas import tpu as pltpu


_T_HW_MAX = 16384   # lane-tile cap: ~6.8 MiB double-buffered (f32), all chips
_SMALL_HW = 1024    # below this, batch-block images per grid step
_BT_MAX = 16        # max images per grid step on the small-spatial path


def _shallow_kernel_2d(w_ref, b_ref, x_ref, o_ref):
    # w_ref: (N, K), b_ref: (N, 1), x_ref: (K, t_hw), o_ref: (N, t_hw)
    acc = jnp.dot(w_ref[...], x_ref[...], preferred_element_type=jnp.float32)
    o_ref[...] = (acc + b_ref[...]).astype(o_ref.dtype)


def _shallow_kernel_batched(w_ref, b_ref, x_ref, o_ref):
    # w_ref: (N, K), b_ref: (N, 1), x_ref: (bt, K, hw), o_ref: (bt, N, hw)
    bt = x_ref.shape[0]
    for i in range(bt):  # bt is static and small: unrolled 2-D MXU dots
        acc = jnp.dot(w_ref[...], x_ref[i], preferred_element_type=jnp.float32)
        o_ref[i] = (acc + b_ref[...]).astype(o_ref.dtype)


def _round_up(x: int, m: int) -> int:
    return ((x + m - 1) // m) * m


def _vmem_limit(block_bytes: int):
    """Only raise the scoped-VMEM limit above the smallest default (16 MiB on
    v5e); never lower it.  With the current tile caps this never triggers."""
    need = block_bytes + (4 << 20)
    return int(need) if need > (16 << 20) else None


@jax.jit
def shallow_forward(x, weight, bias):
    """x: (b, q, f, h, w); weight: (num_classes, input_dim) [PyTorch layout];
    bias: (num_classes,).  Returns (b, num_classes, h, w)."""
    b, q, f, h, w = x.shape
    num_classes, input_dim = weight.shape
    assert input_dim == q * f

    hw = h * w
    x3d = x.reshape(b, input_dim, hw)           # free view (contiguous)
    bias2d = bias.reshape(num_classes, 1)
    itemsize = max(jnp.dtype(x.dtype).itemsize, 4)

    if hw >= _SMALL_HW:
        # One image per grid step; lane axis tiled with cdiv (masked tail).
        t_hw = min(_T_HW_MAX, _round_up(hw, 128))
        grid = (b, pl.cdiv(hw, t_hw))
        block_bytes = 2 * (input_dim + num_classes) * t_hw * itemsize
        out = pl.pallas_call(
            _shallow_kernel_2d,
            out_shape=jax.ShapeDtypeStruct((b, num_classes, hw), x.dtype),
            grid_spec=pltpu.PrefetchScalarGridSpec(
                num_scalar_prefetch=0,
                grid=grid,
                in_specs=[
                    # weight (N, K): grid-invariant, resident in VMEM
                    pl.BlockSpec((num_classes, input_dim), lambda bi, j: (0, 0)),
                    # bias (N, 1): grid-invariant
                    pl.BlockSpec((num_classes, 1), lambda bi, j: (0, 0)),
                    # x (b, K, hw): batch squeezed, hw tiled on the lane axis
                    pl.BlockSpec((None, input_dim, t_hw), lambda bi, j: (bi, 0, j)),
                ],
                out_specs=pl.BlockSpec(
                    (None, num_classes, t_hw), lambda bi, j: (bi, 0, j)),
            ),
            compiler_params=pltpu.CompilerParams(
                dimension_semantics=("parallel", "parallel"),
                vmem_limit_bytes=_vmem_limit(block_bytes),
            ),
        )(weight, bias2d, x3d)
    else:
        # Small spatial size: batch-block images per step.  Keep >= 2 blocks
        # along the (parallel) batch axis when b > 1 so both v7x TensorCores
        # get work while still amortizing per-step overhead.
        bt = max(1, min(_BT_MAX, (b + 1) // 2))
        grid = (pl.cdiv(b, bt),)
        block_bytes = 2 * bt * (input_dim + num_classes) * _round_up(hw, 128) * itemsize
        out = pl.pallas_call(
            _shallow_kernel_batched,
            out_shape=jax.ShapeDtypeStruct((b, num_classes, hw), x.dtype),
            grid_spec=pltpu.PrefetchScalarGridSpec(
                num_scalar_prefetch=0,
                grid=grid,
                in_specs=[
                    pl.BlockSpec((num_classes, input_dim), lambda i: (0, 0)),
                    pl.BlockSpec((num_classes, 1), lambda i: (0, 0)),
                    # hw equals the full array extent here, so the (8,128)
                    # rule is satisfied even for tiny / odd spatial sizes.
                    pl.BlockSpec((bt, input_dim, hw), lambda i: (i, 0, 0)),
                ],
                out_specs=pl.BlockSpec((bt, num_classes, hw), lambda i: (i, 0, 0)),
            ),
            compiler_params=pltpu.CompilerParams(
                dimension_semantics=("parallel",),
                vmem_limit_bytes=_vmem_limit(block_bytes),
            ),
        )(weight, bias2d, x3d)

    # Free view: (b, N, h*w) -> (b, N, h, w)
    return out.reshape(b, num_classes, h, w)


def _reference(x, weight, bias):
    b, q, f, h, w = x.shape
    x2d = jnp.transpose(x, (0, 3, 4, 1, 2)).reshape(b * h * w, q * f)
    ref = x2d @ weight.T + bias
    return jnp.transpose(ref.reshape(b, h, w, weight.shape[0]), (0, 3, 1, 2))


if __name__ == "__main__":
    key = jax.random.PRNGKey(0)
    kx1, kx2, kx3, kw, kb = jax.random.split(key, 5)

    # Shapes consistent with the module's forward:
    #   b=2, q=4, f=8 -> input_dim = q*f = 32, num_classes=20
    b, q, f = 2, 4, 8
    input_dim = q * f
    num_classes = 20

    # Deterministic nn.Linear-style init (uniform in +-1/sqrt(fan_in))
    bound = 1.0 / (input_dim ** 0.5)
    weight = jax.random.uniform(
        kw, (num_classes, input_dim), minval=-bound, maxval=bound,
        dtype=jnp.float32)
    bias = jax.random.uniform(
        kb, (num_classes,), minval=-bound, maxval=bound, dtype=jnp.float32)

    # Case 1: tiny spatial size (h*w = 64) -> batched small-spatial path.
    x1 = jax.random.normal(kx1, (b, q, f, 8, 8), dtype=jnp.float32)
    out1 = jax.block_until_ready(shallow_forward(x1, weight, bias))
    assert out1.shape == (b, num_classes, 8, 8)
    assert jnp.allclose(out1, _reference(x1, weight, bias), atol=1e-5, rtol=1e-5)

    # Case 2: h*w = 256 (lane-dense, still batched small-spatial path).
    x2 = jax.random.normal(kx2, (b, q, f, 16, 16), dtype=jnp.float32)
    out2 = jax.block_until_ready(shallow_forward(x2, weight, bias))
    assert out2.shape == (b, num_classes, 16, 16)
    assert jnp.allclose(out2, _reference(x2, weight, bias), atol=1e-5, rtol=1e-5)

    # Case 3: h*w = 1156 (>= threshold, NOT a multiple of 128) -> per-image
    # path with a 128-multiple lane tile and masked tail stores.
    x3 = jax.random.normal(kx3, (b, q, f, 34, 34), dtype=jnp.float32)
    out3 = jax.block_until_ready(shallow_forward(x3, weight, bias))
    assert out3.shape == (b, num_classes, 34, 34)
    assert jnp.allclose(out3, _reference(x3, weight, bias), atol=1e-5, rtol=1e-5)

    print("KERNEL_OK")
</pallas_src>

<mosaic_0001>
module attributes {stable_mosaic.version = 11 : i64} {
  func.func @_shallow_kernel_batched(%arg0: i32, %arg1: memref<20x32xf32, #tpu.memory_space<vmem>>, %arg2: memref<20x1xf32, #tpu.memory_space<vmem>>, %arg3: memref<1x32x64xf32, #tpu.memory_space<vmem>>, %arg4: memref<1x20x64xf32, #tpu.memory_space<vmem>>) attributes {dimension_semantics = [#tpu.dimension_semantics<parallel>], iteration_bounds = array<i64: 2>, scalar_prefetch = 0 : i64, scratch_operands = 0 : i64, tpu.core_type = #tpu.core_type<tc>, window_params = [{pipeline_mode = #tpu.pipeline_mode<synchronous>, transform_indices = @transform_0, window_bounds = array<i64: 20, 32>}, {pipeline_mode = #tpu.pipeline_mode<synchronous>, transform_indices = @transform_1, window_bounds = array<i64: 20, 1>}, {transform_indices = @transform_2, window_bounds = array<i64: 1, 32, 64>}, {transform_indices = @transform_3, window_bounds = array<i64: 1, 20, 64>}]} {
    %c0 = arith.constant 0 : index
    %c0_0 = arith.constant 0 : index
    %0 = vector.load %arg1[%c0, %c0_0] : memref<20x32xf32, #tpu.memory_space<vmem>>, vector<20x32xf32>
    %c0_1 = arith.constant 0 : index
    %c0_2 = arith.constant 0 : index
    %c0_3 = arith.constant 0 : index
    %1 = vector.load %arg3[%c0_1, %c0_2, %c0_3] : memref<1x32x64xf32, #tpu.memory_space<vmem>>, vector<1x32x64xf32>
    %2 = vector.shape_cast %1 : vector<1x32x64xf32> to vector<32x64xf32>
    %cst = arith.constant dense<0.000000e+00> : vector<20x64xf32>
    %3 = tpu.matmul %0, %2, %cst {dimension_numbers = #tpu.dot_dimension_numbers<[1], [0], [0], [1], [0, 0, 1, 1], [], []>} : vector<20x32xf32>, vector<32x64xf32>, vector<20x64xf32> -> vector<20x64xf32>
    %c0_4 = arith.constant 0 : index
    %c0_5 = arith.constant 0 : index
    %4 = vector.load %arg2[%c0_4, %c0_5] : memref<20x1xf32, #tpu.memory_space<vmem>>, vector<20x1xf32>
    %5 = vector.broadcast %4 : vector<20x1xf32> to vector<20x64xf32>
    %6 = arith.addf %3, %5 : vector<20x64xf32>
    %c0_6 = arith.constant 0 : index
    %c0_7 = arith.constant 0 : index
    %c0_8 = arith.constant 0 : index
    %7 = vector.load %arg4[%c0_6, %c0_7, %c0_8] : memref<1x20x64xf32, #tpu.memory_space<vmem>>, vector<1x20x64xf32>
    %8 = vector.shape_cast %7 : vector<1x20x64xf32> to vector<20x64xf32>
    %9 = vector.shape_cast %6 : vector<20x64xf32> to vector<1x20x64xf32>
    tpu.vector_store %arg4[%c0_6, %c0_7, %c0_8], %9 {strides = array<i32>} : memref<1x20x64xf32, #tpu.memory_space<vmem>>, vector<1x20x64xf32>,
    return
  }
  func.func @transform_0(%arg0: i32) -> (i32, i32) {
    %c0_i32 = arith.constant 0 : i32
    %c0_i32_0 = arith.constant 0 : i32
    %c0_i32_1 = arith.constant 0 : i32
    return %c0_i32, %c0_i32_0 : i32, i32
  }
  func.func @transform_1(%arg0: i32) -> (i32, i32) {
    %c0_i32 = arith.constant 0 : i32
    %c0_i32_0 = arith.constant 0 : i32
    %c0_i32_1 = arith.constant 0 : i32
    return %c0_i32, %c0_i32_0 : i32, i32
  }
  func.func @transform_2(%arg0: i32) -> (i32, i32, i32) {
    %c0_i32 = arith.constant 0 : i32
    %c0_i32_0 = arith.constant 0 : i32
    %c0_i32_1 = arith.constant 0 : i32
    return %arg0, %c0_i32, %c0_i32_0 : i32, i32, i32
  }
  func.func @transform_3(%arg0: i32) -> (i32, i32, i32) {
    %c0_i32 = arith.constant 0 : i32
    %c0_i32_0 = arith.constant 0 : i32
    %c0_i32_1 = arith.constant 0 : i32
    return %arg0, %c0_i32, %c0_i32_0 : i32, i32, i32
  }
}

</mosaic_0001>

<bundles_post_ra>
// kernel: shallow_forward.1
= control target key start
LH: loop header
LB: loop body
LE: loop exit
PB: predicated region body
PF: predicated region fallthrough
CT: control target
= control target key end

     0   :  { %s355_s12 = smov 0   ;;  %s394_s0 = inlined_call_operand.vmem [shape: f32[20,32], index: 0, kind: input, shape index: {}]   ;;  %s395_s1 = inlined_call_operand.vmem [shape: f32[20,1], index: 1, kind: input, shape index: {}]   ;;  %s396_s2 = inlined_call_operand.vmem [shape: f32[2,32,64], index: 2, kind: input, shape index: {}]   ;;  %s397_s3 = inlined_call_operand.vmem [shape: f32[2,20,64], index: 3, kind: output, shape index: {}]  }
   0x1 LB: > { %s292_s13 = sadd.s32 4294967295, %s332_s12   ;;  %p296_p0 = scmp.ge.s32.totalorder %s332_s12, 1  ;;  %s332_s12 = sphi %s355_s12, %s13_s12  }
   0x2   : > { %p137_p1 = scmp.lt.s32.totalorder %s332_s12, 3 }
   0x4   : > { %p138_p2 = pnand %p296_p0, %p137_p1 }
   0x5   : > { %p161_p3 = scmp.lt.s32.totalorder (!%p138_p2), %s292_s13, 1 }
   0x6   : > { %141 = sbr.rel (%p138_p2) target bundleno = 159 (0x9f), region = 32 }
   0xb   : > { %v178_v0 = vld [vmem:[%s395_s1] sm:$0xff]  ;;  %v334_v1 = vmov 0   ;;  %v180_v2 = vld [vmem:[%s395_s1 + $0x10] sm:$0xf]  ;;  %s399_s13 = smov (!%p161_p3, %s292_s13), 1  ;;  %v179_v5 = vld [vmem:[%s395_s1 + $0x8] sm:$0xff] }
   0xc   : > { %324 = vset.pattern.permute.xlu0 %v334_v1  ;;  %325 = vset.pattern.permute.xlu1 %v334_v1  ;;  %s305_s18 = sshll.u32 %s399_s13, 5  ;;  %v171_v8 = vld [vmem:[%s394_s0] sm:$0xff]  ;;  %vm196_vm0 = vcmask 261120   ;;  %v172_v9 = vld [vmem:[%s394_s0 + $0x8] sm:$0xff]  ;;  %v173_v10 = vld [vmem:[%s394_s0 + $0x10] sm:$0xf] }
   0xd   : > { %183 = vperm.xlu0 %324, %v178_v0   ;;  %193 = vperm.xlu1 %325, %v180_v2   ;;  %s165_s21 = scalar_lea.vmem %s396_s2, %s305_s18  ;;  %s314_s30 = smul.u32 24, %s399_s13  ;;  %vm232_vm1 = vcmask 523264   ;;  %vm235_vm2 = vcmask 519168  }
   0xe   : > { %v177_v3 = vld [vmem:[%s165_s21 + $0x18] sm:$0xff]  ;;  %v176_v4 = vld [vmem:[%s165_s21 + $0x10] sm:$0xff]  ;;  %v175_v6 = vld [vmem:[%s165_s21 + $0x8] sm:$0xff] }
   0xf   : > { %218 = vmatpush.msra.mxu0 %v177_v3  ;;  %306 = vmatpush.msra.mxu1 %v177_v3  ;;  %v174_v7 = vld [vmem:[%s165_s21] sm:$0xff]  ;;  %s170_s6 = scalar_lea.vmem %s397_s3, %s314_s30 }
  0x10   : > { %307 = vmatpush.msra.mxu2 %v177_v3 }
  0x11   : > { %219 = vmatpush.msra.mxu0 %v176_v4  ;;  %308 = vmatpush.msra.mxu1 %v176_v4 }
  0x12   : > { %309 = vmatpush.msra.mxu2 %v176_v4 }
  0x13   : > { %220 = vmatpush.msra.mxu0 %v175_v6  ;;  %310 = vmatpush.msra.mxu1 %v175_v6 }
  0x14   : > { %311 = vmatpush.msra.mxu2 %v175_v6 }
  0x15   : > { %188 = vperm.xlu0 %324, %v179_v5   ;;  %221 = vmatpush.msra.mxu0 %v174_v7 }
  0x16   : > { %312 = vmatpush.msra.mxu1 %v174_v7  ;;  %313 = vmatpush.msra.mxu2 %v174_v7 }
  0x17   : > { %300 = vmatmul.msk.f32.vlgmr.msra.gmra.mxu0 %vm196_vm0, %v171_v8  ;;  %301 = vmatmul.msk.f32.vlgmr.msra.gmra.mxu1 %vm196_vm0, %v172_v9 }
  0x18   : > { %302 = vmatmul.msk.f32.vlgmr.msra.gmra.mxu2 %vm196_vm0, %v173_v10 }
  0x7f   : > { %v184_v11 = vpop.permute.xlu0 %183  ;;  %v194_v17 = vpop.permute.xlu1 %193 }
  0x87   : > { %v189_v13 = vpop.permute.xlu0 %188 }
  0x94   : > { %v223_v12 = vpop.f32.mrf.mxu0  ;;  %v226_v15 = vpop.f32.mrf.mxu1 }
  0x95   : > { %v224_v14 = vadd.f32 %v223_v12, %v184_v11  ;;  %v227_v16 = vadd.f32 %v226_v15, %v189_v13 }
  0x97   : > { %233 = vst.msk [vmem:[%s170_s6] sm:$0xff] %vm232_vm1, %v224_v14 }
  0x98   : > { %234 = vst.msk [vmem:[%s170_s6 + $0x8] sm:$0xff] %vm232_vm1, %v227_v16 }
  0x9b   : > { %v229_v18 = vpop.f32.mrf.mxu2 }
  0x9c   : > { %v230_v19 = vadd.f32 %v229_v18, %v194_v17 }
  0x9e   : > { %236 = vst.msk [vmem:[%s170_s6 + $0x10] sm:$0xf] %vm235_vm2, %v230_v19 }
  0x9f PF: > { %s13_s12 = sadd.s32 1, %s332_s12  }
  0xa0   : > { %p10_p4 = scmp.ge.s32.totalorder %s13_s12, 4  }
  0xa2   :  { %12 = sbr.rel (!%p10_p4) target bundleno = 1 (0x1), region = 62 }

</bundles_post_ra>
